<compile_context>
chip_gen: v7x
topology: tpu7x:2x2x1
jax: 0.10.0
libtpu: 0.0.40
codegen_flags: <defaults>
</compile_context>

<pallas_src>
import jax
import jax.numpy as jnp
from jax.experimental import pallas as pl
from jax.experimental.pallas import tpu as pltpu

HIDDEN = 256                      # hidden_dim in the PyTorch module


def _round_up(x, m):
    return (x + m - 1) // m * m


def actor_kernel(x_ref, w1_ref, b1_ref, w2_ref, b2_ref, w3_ref, b3_ref,
                 out_ref):
    # fc1 + relu (f32 MXU accumulation regardless of the compute dtype)
    h1 = jnp.dot(x_ref[...], w1_ref[...],
                 preferred_element_type=jnp.float32) + b1_ref[...]
    h1 = jnp.maximum(h1, 0.0).astype(w2_ref.dtype)
    # fc2 + relu
    h2 = jnp.dot(h1, w2_ref[...],
                 preferred_element_type=jnp.float32) + b2_ref[...]
    h2 = jnp.maximum(h2, 0.0).astype(w3_ref.dtype)
    # fc3 + bias + tanh, stored at the exact (tile, act_dim) width
    y = jnp.dot(h2, w3_ref[...],
                preferred_element_type=jnp.float32) + b3_ref[...]
    out_ref[...] = jnp.tanh(y)


def actor_forward(x, params, *, batch_tile=2048):
    """x: (B, state_dim) -> (B, act_dim) f32 (tanh of fc3).

    `params` must come from prepare_params(): weights already (in, out) and
    in the compute dtype, biases f32.
    """
    w1, b1, w2, b2, w3, b3 = params
    B, state_dim = x.shape
    hidden = w1.shape[1]           # 256
    half = w2.shape[1]             # 128  (derived, not hardcoded)
    act_dim = w3.shape[1]

    x = x.astype(w1.dtype)         # no-op on the default f32 path

    # Batch tiling: large tile to amortize per-step overhead, clamped to the
    # batch; sublane dim kept a multiple of 8, partial last block handled by
    # Pallas (no row padding, no wrapper slicing).
    tile = min(batch_tile, _round_up(B, 8))
    # v7x has 2 TensorCores; the "parallel" batch axis shards across them, so
    # make sure the grid has >= 2 steps when there is enough work per core.
    if B >= 16 and pl.cdiv(B, tile) < 2:
        tile = _round_up(pl.cdiv(B, 2), 8)
    grid = (pl.cdiv(B, tile),)

    full = lambda i: (0, 0)        # grid-invariant: weights fetched once

    return pl.pallas_call(
        actor_kernel,
        out_shape=jax.ShapeDtypeStruct((B, act_dim), jnp.float32),
        grid_spec=pltpu.PrefetchScalarGridSpec(
            num_scalar_prefetch=0,
            grid=grid,
            in_specs=[
                pl.BlockSpec((tile, state_dim), lambda i: (i, 0)),
                pl.BlockSpec((state_dim, hidden), full),
                pl.BlockSpec((1, hidden), full),
                pl.BlockSpec((hidden, half), full),
                pl.BlockSpec((1, half), full),
                pl.BlockSpec((half, act_dim), full),
                pl.BlockSpec((1, act_dim), full),
            ],
            out_specs=pl.BlockSpec((tile, act_dim), lambda i: (i, 0)),
        ),
        compiler_params=pltpu.CompilerParams(
            dimension_semantics=("parallel",),
            # At the default tile the footprint is <1 MiB; this keeps very
            # large batch tiles compiling identically on v5e (16 MiB scoped
            # default) and v6e/v7x.
            vmem_limit_bytes=32 * 1024 * 1024,
        ),
    )(x, w1, b1, w2, b2, w3, b3)


def init_params(key, state_dim, act_dim, hidden=HIDDEN):
    """nn.Linear default U(-1/sqrt(fan_in), +) init; weights stored (in, out)."""
    ks = jax.random.split(key, 6)

    def lin(kw, kb, fan_in, fan_out):
        bound = 1.0 / jnp.sqrt(jnp.float32(fan_in))
        w = jax.random.uniform(kw, (fan_in, fan_out), jnp.float32, -bound, bound)
        b = jax.random.uniform(kb, (1, fan_out), jnp.float32, -bound, bound)
        return w, b

    w1, b1 = lin(ks[0], ks[1], state_dim, hidden)
    w2, b2 = lin(ks[2], ks[3], hidden, hidden // 2)
    w3, b3 = lin(ks[4], ks[5], hidden // 2, act_dim)
    return (w1, b1, w2, b2, w3, b3)


def prepare_params(params, compute_dtype=jnp.float32):
    """One-time weight cast to the compute dtype (biases stay f32).

    Hoisted out of actor_forward so the per-call hot path is only the
    pallas_call (no per-forward convert/pad ops).
    """
    w1, b1, w2, b2, w3, b3 = params
    return (w1.astype(compute_dtype), b1.astype(jnp.float32),
            w2.astype(compute_dtype), b2.astype(jnp.float32),
            w3.astype(compute_dtype), b3.astype(jnp.float32))


def actor_reference(x, params):
    w1, b1, w2, b2, w3, b3 = params
    h1 = jnp.maximum(x @ w1 + b1, 0.0)
    h2 = jnp.maximum(h1 @ w2 + b2, 0.0)
    return jnp.tanh(h2 @ w3 + b3)


if __name__ == "__main__":
    # state_dim = n_servers * n_resources + n_resources + 1, e.g.
    # n_servers=3, n_resources=2 -> state_dim = 9 ; act_dim = 4
    n_servers, n_resources = 3, 2
    state_dim = n_servers * n_resources + n_resources + 1   # 9
    act_dim = 4

    key = jax.random.PRNGKey(0)
    k_params, k_x, k_x2, k_x3 = jax.random.split(key, 4)
    params = init_params(k_params, state_dim, act_dim)
    params_f32 = prepare_params(params, jnp.float32)

    # small batch (single grid step)
    x = jax.random.normal(k_x, (8, state_dim), jnp.float32)
    y = jax.block_until_ready(actor_forward(x, params_f32))
    assert y.shape == (8, act_dim)
    assert jnp.allclose(y, actor_reference(x, params), atol=1e-5, rtol=1e-5)

    # ragged batch: partial last block, no row padding / slicing in wrapper
    x2 = jax.random.normal(k_x2, (13, state_dim), jnp.float32)
    y2 = jax.block_until_ready(actor_forward(x2, params_f32))
    assert jnp.allclose(y2, actor_reference(x2, params), atol=1e-5, rtol=1e-5)

    # larger batch: >= 2 "parallel" grid steps (both v7x TCs) + partial block
    x3 = jax.random.normal(k_x3, (300, state_dim), jnp.float32)
    y3 = jax.block_until_ready(actor_forward(x3, params_f32))
    assert jnp.allclose(y3, actor_reference(x3, params), atol=1e-5, rtol=1e-5)

    # optional bf16 compute path (halves weight/x DMA; f32 MXU accumulation,
    # f32 bias/relu/tanh)
    params_bf16 = prepare_params(params, jnp.bfloat16)
    y_bf16 = jax.block_until_ready(actor_forward(x, params_bf16))
    assert jnp.allclose(y_bf16, actor_reference(x, params), atol=5e-2, rtol=5e-2)

    print("KERNEL_OK")
</pallas_src>

<mosaic_0001>
module attributes {stable_mosaic.version = 11 : i64} {
  func.func @actor_kernel(%arg0: i32, %arg1: memref<8x9xf32, #tpu.memory_space<vmem>>, %arg2: memref<9x256xf32, #tpu.memory_space<vmem>>, %arg3: memref<1x256xf32, #tpu.memory_space<vmem>>, %arg4: memref<256x128xf32, #tpu.memory_space<vmem>>, %arg5: memref<1x128xf32, #tpu.memory_space<vmem>>, %arg6: memref<128x4xf32, #tpu.memory_space<vmem>>, %arg7: memref<1x4xf32, #tpu.memory_space<vmem>>, %arg8: memref<8x4xf32, #tpu.memory_space<vmem>>) attributes {dimension_semantics = [#tpu.dimension_semantics<parallel>], iteration_bounds = array<i64: 1>, scalar_prefetch = 0 : i64, scratch_operands = 0 : i64, tpu.core_type = #tpu.core_type<tc>, window_params = [{transform_indices = @transform_0, window_bounds = array<i64: 8, 9>}, {pipeline_mode = #tpu.pipeline_mode<synchronous>, transform_indices = @transform_1, window_bounds = array<i64: 9, 256>}, {pipeline_mode = #tpu.pipeline_mode<synchronous>, transform_indices = @transform_2, window_bounds = array<i64: 1, 256>}, {pipeline_mode = #tpu.pipeline_mode<synchronous>, transform_indices = @transform_3, window_bounds = array<i64: 256, 128>}, {pipeline_mode = #tpu.pipeline_mode<synchronous>, transform_indices = @transform_4, window_bounds = array<i64: 1, 128>}, {pipeline_mode = #tpu.pipeline_mode<synchronous>, transform_indices = @transform_5, window_bounds = array<i64: 128, 4>}, {pipeline_mode = #tpu.pipeline_mode<synchronous>, transform_indices = @transform_6, window_bounds = array<i64: 1, 4>}, {transform_indices = @transform_7, window_bounds = array<i64: 8, 4>}]} {
    %c0 = arith.constant 0 : index
    %c0_0 = arith.constant 0 : index
    %0 = vector.load %arg1[%c0, %c0_0] : memref<8x9xf32, #tpu.memory_space<vmem>>, vector<8x9xf32>
    %c0_1 = arith.constant 0 : index
    %c0_2 = arith.constant 0 : index
    %1 = vector.load %arg2[%c0_1, %c0_2] : memref<9x256xf32, #tpu.memory_space<vmem>>, vector<9x256xf32>
    %cst = arith.constant dense<0.000000e+00> : vector<8x256xf32>
    %2 = tpu.matmul %0, %1, %cst {dimension_numbers = #tpu.dot_dimension_numbers<[1], [0], [0], [1], [0, 0, 1, 1], [], []>} : vector<8x9xf32>, vector<9x256xf32>, vector<8x256xf32> -> vector<8x256xf32>
    %c0_3 = arith.constant 0 : index
    %c0_4 = arith.constant 0 : index
    %3 = vector.load %arg3[%c0_3, %c0_4] : memref<1x256xf32, #tpu.memory_space<vmem>>, vector<1x256xf32>
    %4 = vector.broadcast %3 : vector<1x256xf32> to vector<8x256xf32>
    %5 = arith.addf %2, %4 : vector<8x256xf32>
    %cst_5 = arith.constant 0.000000e+00 : f32
    %6 = vector.broadcast %cst_5 : f32 to vector<8x256xf32>
    %7 = arith.maximumf %5, %6 : vector<8x256xf32>
    %c0_6 = arith.constant 0 : index
    %c0_7 = arith.constant 0 : index
    %8 = vector.load %arg4[%c0_6, %c0_7] : memref<256x128xf32, #tpu.memory_space<vmem>>, vector<256x128xf32>
    %cst_8 = arith.constant dense<0.000000e+00> : vector<8x128xf32>
    %9 = tpu.matmul %7, %8, %cst_8 {dimension_numbers = #tpu.dot_dimension_numbers<[1], [0], [0], [1], [0, 0, 1, 1], [], []>} : vector<8x256xf32>, vector<256x128xf32>, vector<8x128xf32> -> vector<8x128xf32>
    %c0_9 = arith.constant 0 : index
    %c0_10 = arith.constant 0 : index
    %10 = vector.load %arg5[%c0_9, %c0_10] : memref<1x128xf32, #tpu.memory_space<vmem>>, vector<1x128xf32>
    %11 = vector.broadcast %10 : vector<1x128xf32> to vector<8x128xf32>
    %12 = arith.addf %9, %11 : vector<8x128xf32>
    %cst_11 = arith.constant 0.000000e+00 : f32
    %13 = vector.broadcast %cst_11 : f32 to vector<8x128xf32>
    %14 = arith.maximumf %12, %13 : vector<8x128xf32>
    %c0_12 = arith.constant 0 : index
    %c0_13 = arith.constant 0 : index
    %15 = vector.load %arg6[%c0_12, %c0_13] : memref<128x4xf32, #tpu.memory_space<vmem>>, vector<128x4xf32>
    %cst_14 = arith.constant dense<0.000000e+00> : vector<8x4xf32>
    %16 = tpu.matmul %14, %15, %cst_14 {dimension_numbers = #tpu.dot_dimension_numbers<[1], [0], [0], [1], [0, 0, 1, 1], [], []>} : vector<8x128xf32>, vector<128x4xf32>, vector<8x4xf32> -> vector<8x4xf32>
    %c0_15 = arith.constant 0 : index
    %c0_16 = arith.constant 0 : index
    %17 = vector.load %arg7[%c0_15, %c0_16] : memref<1x4xf32, #tpu.memory_space<vmem>>, vector<1x4xf32>
    %18 = vector.broadcast %17 : vector<1x4xf32> to vector<8x4xf32>
    %19 = arith.addf %16, %18 : vector<8x4xf32>
    %20 = math.tanh %19 : vector<8x4xf32>
    %c0_17 = arith.constant 0 : index
    %c0_18 = arith.constant 0 : index
    %21 = vector.load %arg8[%c0_17, %c0_18] : memref<8x4xf32, #tpu.memory_space<vmem>>, vector<8x4xf32>
    tpu.vector_store %arg8[%c0_17, %c0_18], %20 {strides = array<i32>} : memref<8x4xf32, #tpu.memory_space<vmem>>, vector<8x4xf32>,
    return
  }
  func.func @transform_0(%arg0: i32) -> (i32, i32) {
    %c0_i32 = arith.constant 0 : i32
    %c0_i32_0 = arith.constant 0 : i32
    return %arg0, %c0_i32 : i32, i32
  }
  func.func @transform_1(%arg0: i32) -> (i32, i32) {
    %c0_i32 = arith.constant 0 : i32
    %c0_i32_0 = arith.constant 0 : i32
    %c0_i32_1 = arith.constant 0 : i32
    return %c0_i32, %c0_i32_0 : i32, i32
  }
  func.func @transform_2(%arg0: i32) -> (i32, i32) {
    %c0_i32 = arith.constant 0 : i32
    %c0_i32_0 = arith.constant 0 : i32
    %c0_i32_1 = arith.constant 0 : i32
    return %c0_i32, %c0_i32_0 : i32, i32
  }
  func.func @transform_3(%arg0: i32) -> (i32, i32) {
    %c0_i32 = arith.constant 0 : i32
    %c0_i32_0 = arith.constant 0 : i32
    %c0_i32_1 = arith.constant 0 : i32
    return %c0_i32, %c0_i32_0 : i32, i32
  }
  func.func @transform_4(%arg0: i32) -> (i32, i32) {
    %c0_i32 = arith.constant 0 : i32
    %c0_i32_0 = arith.constant 0 : i32
    %c0_i32_1 = arith.constant 0 : i32
    return %c0_i32, %c0_i32_0 : i32, i32
  }
  func.func @transform_5(%arg0: i32) -> (i32, i32) {
    %c0_i32 = arith.constant 0 : i32
    %c0_i32_0 = arith.constant 0 : i32
    %c0_i32_1 = arith.constant 0 : i32
    return %c0_i32, %c0_i32_0 : i32, i32
  }
  func.func @transform_6(%arg0: i32) -> (i32, i32) {
    %c0_i32 = arith.constant 0 : i32
    %c0_i32_0 = arith.constant 0 : i32
    %c0_i32_1 = arith.constant 0 : i32
    return %c0_i32, %c0_i32_0 : i32, i32
  }
  func.func @transform_7(%arg0: i32) -> (i32, i32) {
    %c0_i32 = arith.constant 0 : i32
    %c0_i32_0 = arith.constant 0 : i32
    return %arg0, %c0_i32 : i32, i32
  }
}

</mosaic_0001>

<bundles_post_ra>
// kernel: tpu_custom_call.1
= control target key start
LH: loop header
LB: loop body
LE: loop exit
PB: predicated region body
PF: predicated region fallthrough
CT: control target
= control target key end

     0   :  { %12 = vsyncpa [#allocation3], 0  ;;  %s539_s24 = smov [#allocation2]   ;;  %s683_s0 = inlined_call_operand.vmem [shape: f32[8,9], index: 0, kind: input, shape index: {}]   ;;  %s684_s1 = inlined_call_operand.vmem [shape: f32[9,256], index: 1, kind: input, shape index: {}]   ;;  %s685_s2 = inlined_call_operand.vmem [shape: f32[1,256], index: 2, kind: input, shape index: {}]   ;;  %s686_s3 = inlined_call_operand.hbm [shape: f32[256,128], index: 3, kind: input, shape index: {}]   ;;  %s687_s4 = inlined_call_operand.vmem [shape: f32[1,128], index: 4, kind: input, shape index: {}]   ;;  %s688_s5 = inlined_call_operand.vmem [shape: f32[128,4], index: 5, kind: input, shape index: {}]   ;;  %s689_s6 = inlined_call_operand.vmem [shape: f32[1,4], index: 6, kind: input, shape index: {}]   ;;  %s690_s7 = inlined_call_operand.vmem [shape: f32[8,4], index: 7, kind: output, shape index: {}]  }
   0x1   :  { %s24_s25 = sshll.u32 %s539_s24, 4  ;;  %s515_s28 = scalar_lea.hbm %s686_s3, 4096  ;;  %s25_s25 = int_to_ptr.vmem [resolvable:$true] %s24_s25 }
   0x2   :  { %p516_p0 = scmp.ne.s32.totalorder %s686_s3, %s515_s28  ;;  %p519_p1 = scmp.lt.u32.totalorder %s515_s28, %s686_s3 }
   0x4   :  { %p521_p2 = pnand %p519_p1, %p516_p0 }
   0x6   :  { %524 = shalt.err (!%p521_p2)
}
   0x7   :  { %s525_s10 = scalar_lea.vmem %s25_s25, 4096  ;;  %p530_p4 = scmp.lt.s32.totalorder %s25_s25, %s25_s25 }
   0x8   :  { %p526_p3 = scmp.ne.s32.totalorder %s25_s25, %s525_s10  ;;  %p531_p5 = scmp.lt.s32.totalorder %s525_s10, %s525_s10 }
   0xa   :  { %p532_p6 = por %p531_p5, %p530_p4 }
   0xc   :  { %p533_p7 = pnand %p532_p6, %p526_p3 }
   0xe   :  { %536 = shalt.err (!%p533_p7)
}
   0xf   :  { %s540_s11 = smov 128   ;;  %s541_s12 = smov 8  }
  0x10   :  { %30 = dma.hbm_to_vmem [thread:$0]  %s686_s3, 4096, %s25_s25, [#allocation3], %s540_s11, %s540_s11, %s541_s12  }
  0x11   :  { %537 = dma.done.wait [#allocation3], 4096  }
  0x12   :  { %538 = vsyncadd [#allocation3], 4294963200  ;;  %v542_v0 = vmov 0.0   ;;  %vm61_vm0 = vcmask 1040384   ;;  %vm543_vm1 = vmmov 1   ;;  %v42_v2 = vld [vmem:[%s684_s1 + $0x8] sm:$0xff] }
  0x13   :  { %132 = vmatprep.mubr.f32.mxu0 %v542_v0  ;;  %vm599_vm2 = vmpackc.low %vm61_vm0, %vm543_vm1  ;;  %v44_v3 = vld [vmem:[%s684_s1 + $0x18] sm:$0x1]  ;;  %v41_v4 = vld [vmem:[%s684_s1] sm:$0xff]  ;;  %vm57_vm3 = vcmask 72704   ;;  %v544_v60 = vmov 0.0|0.0   ;;  %vm545_vm4 = vmmov 0  }
  0x14   :  { %v444_v5 = vpack.c.bf16 %v44_v3, %v42_v2  ;;  %v43_v6 = vld [vmem:[%s684_s1 + $0x10] sm:$0x1]  ;;  %v157_v7 = vld [vmem:[#allocation2 + $0x80] sm:$0xff]  ;;  %v158_v10 = vld [vmem:[#allocation2 + $0x88] sm:$0xff]  ;;  %vm345_vm5 = vcmask 31744  }
  0x15   :  { %v447_v8 = vpack.c.bf16 %v43_v6, %v41_v4  ;;  %v40_v9 = vld [vmem:[%s683_s0] sm:$0xff]  ;;  %v142_v12 = vld [vmem:[#allocation2 + $0x8] sm:$0xff]  ;;  %v450_v13 = vpack.c.bf16 %v158_v10, %v157_v7  ;;  %v159_v15 = vld [vmem:[#allocation2 + $0x90] sm:$0xff] }
  0x16   :  { %v141_v11 = vld [vmem:[#allocation2] sm:$0xff]  ;;  %446 = vmatprep.subr.msk.bf16.mxu0 %vm599_vm2, %v444_v5  ;;  %v160_v16 = vld [vmem:[#allocation2 + $0x98] sm:$0xff]  ;;  %v143_v17 = vld [vmem:[#allocation2 + $0x10] sm:$0xff] }
  0x17   :  { %v452_v14 = vpack.c.bf16 %v142_v12, %v141_v11  ;;  %449 = vmatpush1.bf16.msk.msra.mxu0 %vm599_vm2, %v447_v8  ;;  %v454_v18 = vpack.c.bf16 %v160_v16, %v159_v15  ;;  %v144_v19 = vld [vmem:[#allocation2 + $0x18] sm:$0xff]  ;;  %v161_v20 = vld [vmem:[#allocation2 + $0xa0] sm:$0xff]  ;;  %v162_v21 = vld [vmem:[#allocation2 + $0xa8] sm:$0xff]  ;;  %451 = vmatprep.subr.bf16.mxu1 %v450_v13  ;;  %v47_v13 = vlaneseq }
  0x18   :  { %v456_v22 = vpack.c.bf16 %v144_v19, %v143_v17  ;;  %v458_v23 = vpack.c.bf16 %v162_v21, %v161_v20  ;;  %v145_v24 = vld [vmem:[#allocation2 + $0x20] sm:$0xff]  ;;  %v146_v25 = vld [vmem:[#allocation2 + $0x28] sm:$0xff]  ;;  %v163_v26 = vld [vmem:[#allocation2 + $0xb0] sm:$0xff]  ;;  %482 = vmatprep.subr.bf16.mxu0 %v544_v60 }
  0x19   :  { %453 = vmatpush3.bf16.msra.mxu1 %v452_v14  ;;  %v164_v27 = vld [vmem:[#allocation2 + $0xb8] sm:$0xff]  ;;  %v460_v28 = vpack.c.bf16 %v146_v25, %v145_v24  ;;  %v147_v30 = vld [vmem:[#allocation2 + $0x30] sm:$0xff]  ;;  %v165_v32 = vld [vmem:[#allocation2 + $0xc0] sm:$0xff]  ;;  %v48_v14 = vshrl.u32 %v47_v13, 7 }
  0x1a   :  { %354 = vmatmul.mubr.msk.f32.vlgmr.msra.gmra.mrb[0].mxu0 %vm57_vm3, %v40_v9  ;;  %455 = vmatprep.subr.bf16.mxu1 %v454_v18  ;;  %v462_v29 = vpack.c.bf16 %v164_v27, %v163_v26  ;;  %v148_v31 = vld [vmem:[#allocation2 + $0x38] sm:$0xff]  ;;  %v166_v33 = vld [vmem:[#allocation2 + $0xc8] sm:$0xff]  ;;  %v149_v36 = vld [vmem:[#allocation2 + $0x40] sm:$0xff] }
  0x1b   :  { %v464_v34 = vpack.c.bf16 %v148_v31, %v147_v30  ;;  %v466_v35 = vpack.c.bf16 %v166_v33, %v165_v32  ;;  %v150_v37 = vld [vmem:[#allocation2 + $0x48] sm:$0xff]  ;;  %v167_v38 = vld [vmem:[#allocation2 + $0xd0] sm:$0xff]  ;;  %v168_v39 = vld [vmem:[#allocation2 + $0xd8] sm:$0xff]  ;;  %v49_v15 = vsub.s32 0, %v48_v14  ;;  %v53_v17 = vsub.s32 1, %v48_v14  ;;  %441 = vmatprep.mubr.msk.f32.mxu0 %vm545_vm4, %v542_v0 }
  0x1c   :  { %v468_v40 = vpack.c.bf16 %v150_v37, %v149_v36  ;;  %v470_v41 = vpack.c.bf16 %v168_v39, %v167_v38  ;;  %v151_v42 = vld [vmem:[#allocation2 + $0x50] sm:$0xff]  ;;  %v152_v43 = vld [vmem:[#allocation2 + $0x58] sm:$0xff]  ;;  %v169_v44 = vld [vmem:[#allocation2 + $0xe0] sm:$0xff] }
  0x1d   :  { %457 = vmatpush3.bf16.msra.mxu1 %v456_v22  ;;  %v170_v45 = vld [vmem:[#allocation2 + $0xe8] sm:$0xff]  ;;  %v472_v46 = vpack.c.bf16 %v152_v43, %v151_v42  ;;  %v153_v48 = vld [vmem:[#allocation2 + $0x60] sm:$0xff]  ;;  %v171_v51 = vld [vmem:[#allocation2 + $0xf0] sm:$0xff] }
  0x1e   :  { %459 = vmatprep.subr.bf16.mxu1 %v458_v23  ;;  %v474_v47 = vpack.c.bf16 %v170_v45, %v169_v44  ;;  %v154_v49 = vld [vmem:[#allocation2 + $0x68] sm:$0xff]  ;;  %v172_v52 = vld [vmem:[#allocation2 + $0xf8] sm:$0xff]  ;;  %v155_v54 = vld [vmem:[#allocation2 + $0x70] sm:$0xff] }
  0x1f   :  { %v476_v50 = vpack.c.bf16 %v154_v49, %v153_v48  ;;  %v478_v53 = vpack.c.bf16 %v172_v52, %v171_v51  ;;  %v156_v55 = vld [vmem:[#allocation2 + $0x78] sm:$0xff]  ;;  %v251_v57 = vld [vmem:[%s688_s5] sm:$0xff]  ;;  %v252_v58 = vld [vmem:[%s688_s5 + $0x8] sm:$0xff] }
  0x20   :  { %v480_v56 = vpack.c.bf16 %v156_v55, %v155_v54  ;;  %v253_v59 = vld [vmem:[%s688_s5 + $0x10] sm:$0xff]  ;;  %v483_v61 = vpack.c.bf16 %v252_v58, %v251_v57  ;;  %v254_v62 = vld [vmem:[%s688_s5 + $0x18] sm:$0xff]  ;;  %v255_v1 = vld [vmem:[%s688_s5 + $0x20] sm:$0xff] }
  0x21   :  { %461 = vmatpush3.bf16.msra.mxu1 %v460_v28  ;;  %v486_v63 = vpack.c.bf16 %v254_v62, %v253_v59  ;;  %v256_v2 = vld [vmem:[%s688_s5 + $0x28] sm:$0xff]  ;;  %v257_v4 = vld [vmem:[%s688_s5 + $0x30] sm:$0xff]  ;;  %v258_v5 = vld [vmem:[%s688_s5 + $0x38] sm:$0xff] }
  0x22   :  { %463 = vmatprep.subr.bf16.mxu1 %v462_v29  ;;  %484 = vmatpush3.bf16.msra.mxu0 %v483_v61  ;;  %v489_v3 = vpack.c.bf16 %v256_v2, %v255_v1  ;;  %v492_v6 = vpack.c.bf16 %v258_v5, %v257_v4  ;;  %v259_v7 = vld [vmem:[%s688_s5 + $0x40] sm:$0xff]  ;;  %v260_v8 = vld [vmem:[%s688_s5 + $0x48] sm:$0xff]  ;;  %v261_v10 = vld [vmem:[%s688_s5 + $0x50] sm:$0xff] }
  0x23   :  { %485 = vmatprep.subr.bf16.mxu0 %v544_v60  ;;  %v495_v9 = vpack.c.bf16 %v260_v8, %v259_v7  ;;  %v262_v11 = vld [vmem:[%s688_s5 + $0x58] sm:$0xff]  ;;  %v45_v16 = vld [vmem:[%s685_s2] sm:$0x3]  ;;  %v264_v27 = vld [vmem:[%s688_s5 + $0x68] sm:$0xff] }
  0x24   :  { %v498_v12 = vpack.c.bf16 %v262_v11, %v261_v10  ;;  %v50_v18 = vrot.slane %v45_v16, %v49_v15  ;;  %v54_v19 = vrot.slane %v45_v16, %v53_v17  ;;  %v263_v26 = vld [vmem:[%s688_s5 + $0x60] sm:$0xff]  ;;  %v265_v29 = vld [vmem:[%s688_s5 + $0x70] sm:$0xff]  ;;  %v266_v30 = vld [vmem:[%s688_s5 + $0x78] sm:$0xff] }
  0x25   :  { %465 = vmatpush3.bf16.msra.mxu1 %v464_v34  ;;  %v501_v28 = vpack.c.bf16 %v264_v27, %v263_v26  ;;  %v504_v31 = vpack.c.bf16 %v266_v30, %v265_v29  ;;  %v355_v33 = vld [vmem:[%s687_s4] ss:$0 sm:$0xff] }
  0x26   :  { %467 = vmatprep.subr.bf16.mxu1 %v466_v35  ;;  %487 = vmatpush3.bf16.msra.mxu0 %v486_v63  ;;  %v356_v38 = vld [vmem:[%s689_s6] ss:$0 sm:$0xff] }
  0x27   :  { %488 = vmatprep.subr.bf16.mxu0 %v544_v60 }
  0x29   :  { %469 = vmatpush3.bf16.msra.mxu1 %v468_v40 }
  0x2a   :  { %471 = vmatprep.subr.bf16.mxu1 %v470_v41  ;;  %490 = vmatpush3.bf16.msra.mxu0 %v489_v3 }
  0x2b   :  { %491 = vmatprep.subr.bf16.mxu0 %v544_v60 }
  0x2d   :  { %473 = vmatpush3.bf16.msra.mxu1 %v472_v46 }
  0x2e   :  { %475 = vmatprep.subr.bf16.mxu1 %v474_v47  ;;  %493 = vmatpush3.bf16.msra.mxu0 %v492_v6 }
  0x2f   :  { %494 = vmatprep.subr.bf16.mxu0 %v544_v60 }
  0x31   :  { %477 = vmatpush3.bf16.msra.mxu1 %v476_v50 }
  0x32   :  { %479 = vmatprep.subr.bf16.mxu1 %v478_v53  ;;  %496 = vmatpush3.bf16.msra.mxu0 %v495_v9 }
  0x33   :  { %497 = vmatprep.subr.bf16.mxu0 %v544_v60 }
  0x35   :  { %481 = vmatpush3.bf16.msra.mxu1 %v480_v56 }
  0x36   :  { %499 = vmatpush3.bf16.msra.mxu0 %v498_v12 }
  0x37   :  { %500 = vmatprep.subr.bf16.mxu0 %v544_v60 }
  0x3a   :  { %502 = vmatpush3.bf16.msra.mxu0 %v501_v28 }
  0x3b   :  { %503 = vmatprep.subr.bf16.mxu0 %v544_v60 }
  0x3e   :  { %505 = vmatpush3.bf16.msra.mxu0 %v504_v31 }
  0xed   :  { %v134_v20 = vpop.f32.mrb[0].mxu0 }
  0xee   :  { %v135_v21 = vadd.f32 %v134_v20, %v50_v18  ;;  %v136_v22 = vpop.f32.mrb[1].mxu0 }
  0xef   :  { %v137_v23 = vadd.f32 %v136_v22, %v54_v19 }
  0xf0   :  { %v139_v25 = vmax.f32 %v135_v21, 0.0 }
  0xf1   :  { %v140_v24 = vmax.f32 %v137_v23, 0.0 }
  0xf3   :  { %244 = vmatprep.mubr.f32.mxu1 %v140_v24 }
  0xf4   :  { %245 = vmatmul.mubr.f32.vlgmr.msra.gmra.mrb[0].mxu1 %v139_v25 }
 0x1c7   :  { %v389_v32 = vpop.f32.mrb[0].mxu1 }
 0x1c8   :  { %v390_v34 = vpop.f32.mrb[1].mxu1 }
 0x1c9   :  { %v391_v35 = vadd.f32 %v390_v34, %v389_v32 }
 0x1cb   :  { %v247_v36 = vadd.f32 %v391_v35, %v355_v33 }
 0x1cd   :  { %v250_v37 = vmax.f32 %v247_v36, 0.0 }
 0x1cf   :  { %442 = vmatmul.mubr.f32.vlgmr.msra.gmra.mrb[2].mxu0 %v250_v37 }
 0x2a2   :  { %v340_v39 = vpop.f32.mrb[2].mxu0 }
 0x2a3   :  { %v341_v40 = vadd.f32 %v356_v38, %v340_v39  ;;  %v443_v41 = vpop.f32.mrb[3].mxu0 }
 0x2a5   :  { %513 = vtanh.f32 %v341_v40 }
 0x2af   :  { %v514_v0 = vpop.eup %513 }
 0x2b0   :  { %346 = vst.msk [vmem:[%s690_s7] sm:$0xff] %vm345_vm5, %v514_v0 }
 0x2b1   :  { %351 = vsyncpa [#allocation3], 1 }

</bundles_post_ra>
